<compile_context>
chip_gen: v6e
topology: v6e:2x2x1
jax: 0.10.0
libtpu: 0.0.40
codegen_flags: <defaults>
</compile_context>

<pallas_src>
import math

import jax
import jax.numpy as jnp
from jax.experimental import pallas as pl
from jax.experimental.pallas import tpu as pltpu


# ---------------------------------------------------------------------------
# Kernels
# ---------------------------------------------------------------------------

def _row_kernel(x_ref, s_ref, o_ref):
    """Row-tiled path. x_ref: (TM, H*W), s_ref: (TM, 1) per-row gate logits."""
    s = s_ref[...].astype(jnp.float32)
    gate = 1.0 / (1.0 + jnp.exp(-s))                      # exact sigmoid (EUP)
    x = x_ref[...]
    o_ref[...] = (x * gate.astype(x.dtype)).astype(o_ref.dtype)


def _lane_dense_kernel(x_ref, s_ref, o_ref):
    """Lane-dense path. x_ref: (TM, K*HW) rows, s_ref: (TM, K) gate logits.

    Gate value s[r, k] applies to the HW contiguous lanes x[r, k*HW:(k+1)*HW].
    Sigmoid is computed on the small dense (TM, K) tile; the expansion over HW
    lanes is VPU/XLU filler under the mem-bound roofline.
    """
    tm, k = s_ref.shape
    hw = x_ref.shape[-1] // k
    s = s_ref[...].astype(jnp.float32)
    sig = 1.0 / (1.0 + jnp.exp(-s))                       # dense: only TM*K elems
    gate = jnp.broadcast_to(sig[:, :, None], (tm, k, hw)).reshape(tm, k * hw)
    x = x_ref[...]
    o_ref[...] = (x * gate.astype(x.dtype)).astype(o_ref.dtype)


# ---------------------------------------------------------------------------
# Tiling helpers
# ---------------------------------------------------------------------------

_VMEM_BLOCK_BUDGET = 12 * 1024 * 1024      # conservative across v5e/v6e/v7x
_VMEM_LIMIT_BYTES = 32 * 1024 * 1024


def _round_up(x, m):
    return ((x + m - 1) // m) * m


def _sublane_quantum(dtype) -> int:
    # 8 for 4-byte, 16 for 2-byte, 32 for 1-byte dtypes.
    return max(8, 32 // jnp.dtype(dtype).itemsize)


def _tensorcores_per_device() -> int:
    """Best-effort: 2 TensorCores per JAX device on v4/v5p/v7x, else 1."""
    try:
        kind = jax.devices()[0].device_kind.lower()
    except Exception:
        return 1
    if any(tag in kind for tag in ("v4", "v5p", "v7", "7x")):
        return 2
    return 1


def _pick_block_rows(n_rows, x_row_elems_pad, s_row_elems_pad,
                     x_itemsize, s_itemsize, quantum, n_cores):
    """Rows per block: VMEM-budgeted (padded sizes, double-buffered), balanced
    across TensorCores, rounded to the dtype sublane quantum."""
    bytes_per_row = 2 * (2 * x_row_elems_pad * x_itemsize
                         + s_row_elems_pad * s_itemsize)
    tm_vmem = max(quantum,
                  (_VMEM_BLOCK_BUDGET // bytes_per_row) // quantum * quantum)
    tm_target = _round_up(pl.cdiv(n_rows, max(1, n_cores)), quantum)
    tm = min(n_rows, max(quantum, tm_target), tm_vmem)
    if tm < n_rows:
        tm = max(quantum, (tm // quantum) * quantum)
    return tm


# ---------------------------------------------------------------------------
# pallas_call builders
# ---------------------------------------------------------------------------

def _call_row_path(x2d, s2d, rows, lanes, n_cores):
    q = max(_sublane_quantum(x2d.dtype), _sublane_quantum(s2d.dtype))
    tm = _pick_block_rows(rows, _round_up(lanes, 128), 128,
                          x2d.dtype.itemsize, s2d.dtype.itemsize, q, n_cores)
    grid = (pl.cdiv(rows, tm),)
    return pl.pallas_call(
        _row_kernel,
        out_shape=jax.ShapeDtypeStruct((rows, lanes), x2d.dtype),
        grid_spec=pltpu.PrefetchScalarGridSpec(
            num_scalar_prefetch=0,
            grid=grid,
            in_specs=[
                pl.BlockSpec((tm, lanes), lambda i: (i, 0)),
                pl.BlockSpec((tm, 1), lambda i: (i, 0)),
            ],
            out_specs=pl.BlockSpec((tm, lanes), lambda i: (i, 0)),
        ),
        compiler_params=pltpu.CompilerParams(
            dimension_semantics=("parallel",),
            vmem_limit_bytes=_VMEM_LIMIT_BYTES,
        ),
    )(x2d, s2d)


def _call_lane_dense(xf, sf, n_rows, k, lanes):
    q = max(_sublane_quantum(xf.dtype), _sublane_quantum(sf.dtype))
    width = k * lanes                                     # multiple of 128
    tm = _pick_block_rows(n_rows, width, _round_up(k, 128),
                          xf.dtype.itemsize, sf.dtype.itemsize, q, 1)
    grid = (pl.cdiv(n_rows, tm),)
    return pl.pallas_call(
        _lane_dense_kernel,
        out_shape=jax.ShapeDtypeStruct((n_rows, width), xf.dtype),
        grid_spec=pltpu.PrefetchScalarGridSpec(
            num_scalar_prefetch=0,
            grid=grid,
            in_specs=[
                pl.BlockSpec((tm, width), lambda i: (i, 0)),
                pl.BlockSpec((tm, k), lambda i: (i, 0)),
            ],
            out_specs=pl.BlockSpec((tm, width), lambda i: (i, 0)),
        ),
        compiler_params=pltpu.CompilerParams(
            dimension_semantics=("parallel",),
            vmem_limit_bytes=_VMEM_LIMIT_BYTES,
        ),
    )(xf, sf)


# ---------------------------------------------------------------------------
# Public wrapper (forward pass of module M)
# ---------------------------------------------------------------------------

_LANE_DENSE_UNSUPPORTED = set()   # shapes whose folded path failed to lower


def sigmoid_mul(x793, x789):
    """x793: (N, C, 1, 1) gate logits; x789: (N, C, H, W) NCHW activations."""
    N, C, H, W = x789.shape
    assert x793.shape == (N, C, 1, 1)
    rows, lanes = N * C, H * W
    n_cores = _tensorcores_per_device()

    # ---- lane-dense folded path (last dim a multiple of 128) -------------
    g = math.gcd(lanes, 128)
    k = 128 // g
    use_fold = (k > 1) and (lanes % 128 != 0) and (rows % k == 0)
    if use_fold and n_cores > 1:
        r = rows // k
        q = max(_sublane_quantum(x789.dtype), _sublane_quantum(x793.dtype))
        # Prefer the row path when only it can split evenly across both TCs.
        if (r % (n_cores * q) != 0) and (rows % (n_cores * q) == 0):
            use_fold = False
    cache_key = (rows, lanes, str(jnp.dtype(x789.dtype)), str(jnp.dtype(x793.dtype)))
    if use_fold and cache_key not in _LANE_DENSE_UNSUPPORTED:
        r = rows // k
        xf = x789.reshape(r, k * lanes)        # free views of contiguous NCHW
        sf = x793.reshape(r, k)
        try:
            out = _call_lane_dense(xf, sf, r, k, lanes)
            return out.reshape(N, C, H, W)
        except Exception:
            # This Mosaic version rejects the in-kernel (TM,K,HW)->(TM,K*HW)
            # relayout for this shape: fall back to the proven row-tiled path.
            _LANE_DENSE_UNSUPPORTED.add(cache_key)

    # ---- row-tiled path (proven) ------------------------------------------
    x2d = x789.reshape(rows, lanes)
    s2d = x793.reshape(rows, 1)
    out2d = _call_row_path(x2d, s2d, rows, lanes, n_cores)
    return out2d.reshape(N, C, H, W)


# ---------------------------------------------------------------------------
# Self-test
# ---------------------------------------------------------------------------

if __name__ == "__main__":
    key = jax.random.PRNGKey(0)

    def check(shape):
        N, C, H, W = shape
        k1, k2 = jax.random.split(jax.random.fold_in(key, N * C * H * W))
        x789 = jax.random.normal(k1, (N, C, H, W), dtype=jnp.float32)
        x793 = jax.random.normal(k2, (N, C, 1, 1), dtype=jnp.float32)
        out = jax.block_until_ready(sigmoid_mul(x793, x789))
        ref = jax.nn.sigmoid(x793) * x789
        assert out.shape == (N, C, H, W)
        assert jnp.allclose(out, ref, atol=1e-6, rtol=1e-6)

    # Small batched shape (N > 1 per-sample gates); rows=320 is not divisible
    # by 128 so this exercises the row-tiled path.
    check((2, 160, 7, 7))
    # Module shape (1, 2304, 7, 7): rows=2304, H*W=49 -> lane-dense folded
    # (18, 6272) path where supported, otherwise the row-tiled fallback.
    check((1, 2304, 7, 7))

    print("KERNEL_OK")
</pallas_src>

<mosaic_0001>
module attributes {stable_mosaic.version = 11 : i64} {
  func.func @_row_kernel(%arg0: i32, %arg1: memref<320x49xf32, #tpu.memory_space<vmem>>, %arg2: memref<320x1xf32, #tpu.memory_space<vmem>>, %arg3: memref<320x49xf32, #tpu.memory_space<vmem>>) attributes {dimension_semantics = [#tpu.dimension_semantics<parallel>], iteration_bounds = array<i64: 1>, scalar_prefetch = 0 : i64, scratch_operands = 0 : i64, tpu.core_type = #tpu.core_type<tc>, window_params = [{transform_indices = @transform_0, window_bounds = array<i64: 320, 49>}, {transform_indices = @transform_1, window_bounds = array<i64: 320, 1>}, {transform_indices = @transform_2, window_bounds = array<i64: 320, 49>}]} {
    %c0 = arith.constant 0 : index
    %c0_0 = arith.constant 0 : index
    %0 = vector.load %arg2[%c0, %c0_0] : memref<320x1xf32, #tpu.memory_space<vmem>>, vector<320x1xf32>
    %cst = arith.constant 0.000000e+00 : f32
    %1 = vector.broadcast %cst : f32 to vector<320x1xf32>
    %2 = arith.subf %1, %0 : vector<320x1xf32>
    %3 = math.exp %2 : vector<320x1xf32>
    %cst_1 = arith.constant 1.000000e+00 : f32
    %4 = vector.broadcast %cst_1 : f32 to vector<320x1xf32>
    %5 = arith.addf %4, %3 : vector<320x1xf32>
    %cst_2 = arith.constant 1.000000e+00 : f32
    %6 = vector.broadcast %cst_2 : f32 to vector<320x1xf32>
    %7 = arith.divf %6, %5 : vector<320x1xf32>
    %c0_3 = arith.constant 0 : index
    %c0_4 = arith.constant 0 : index
    %8 = vector.load %arg1[%c0_3, %c0_4] : memref<320x49xf32, #tpu.memory_space<vmem>>, vector<320x49xf32>
    %9 = vector.broadcast %7 : vector<320x1xf32> to vector<320x49xf32>
    %10 = arith.mulf %8, %9 : vector<320x49xf32>
    %c0_5 = arith.constant 0 : index
    %c0_6 = arith.constant 0 : index
    %11 = vector.load %arg3[%c0_5, %c0_6] : memref<320x49xf32, #tpu.memory_space<vmem>>, vector<320x49xf32>
    tpu.vector_store %arg3[%c0_5, %c0_6], %10 {strides = array<i32>} : memref<320x49xf32, #tpu.memory_space<vmem>>, vector<320x49xf32>,
    return
  }
  func.func @transform_0(%arg0: i32) -> (i32, i32) {
    %c0_i32 = arith.constant 0 : i32
    %c0_i32_0 = arith.constant 0 : i32
    return %arg0, %c0_i32 : i32, i32
  }
  func.func @transform_1(%arg0: i32) -> (i32, i32) {
    %c0_i32 = arith.constant 0 : i32
    %c0_i32_0 = arith.constant 0 : i32
    return %arg0, %c0_i32 : i32, i32
  }
  func.func @transform_2(%arg0: i32) -> (i32, i32) {
    %c0_i32 = arith.constant 0 : i32
    %c0_i32_0 = arith.constant 0 : i32
    return %arg0, %c0_i32 : i32, i32
  }
}

</mosaic_0001>

<bundles_post_ra>
// kernel: tpu_custom_call.1
= control target key start
LH: loop header
LB: loop body
LE: loop exit
PB: predicated region body
PF: predicated region fallthrough
CT: control target
= control target key end

     0   :  { %v779_v0 = vmov 0   ;;  %vm571_vm0 = vcmask 400384   ;;  %s1195_s1 = inlined_call_operand.vmem [shape: f32[320,1], index: 1, kind: input, shape index: {}]   ;;  %s1196_s0 = inlined_call_operand.vmem [shape: f32[320,49], index: 0, kind: input, shape index: {}]   ;;  %s1197_s2 = inlined_call_operand.vmem [shape: f32[320,49], index: 2, kind: output, shape index: {}]  }
   0x1   :  { %618 = vset.pattern.permute.xlu1 %v779_v0  ;;  %617 = vset.pattern.permute.xlu0 %v779_v0  ;;  %v13_v1 = vld [vmem:[%s1195_s1 + $0x10] sm:$0xff]  ;;  %v11_v2 = vld [vmem:[%s1195_s1] sm:$0xff]  ;;  %v14_v3 = vld [vmem:[%s1195_s1 + $0x18] sm:$0xff] }
   0x2   :  { %v53_v4 = vsub.f32 0.0, %v13_v1  ;;  %v51_v5 = vsub.f32 0.0, %v11_v2  ;;  %v54_v6 = vsub.f32 0.0, %v14_v3  ;;  %v12_v7 = vld [vmem:[%s1195_s1 + $0x8] sm:$0xff]  ;;  %v15_v9 = vld [vmem:[%s1195_s1 + $0x20] sm:$0xff]  ;;  %v18_v13 = vld [vmem:[%s1195_s1 + $0x38] sm:$0xff] }
   0x3   :  { %v16_v8 = vld [vmem:[%s1195_s1 + $0x28] sm:$0xff]  ;;  %v52_v10 = vsub.f32 0.0, %v12_v7  ;;  %v55_v12 = vsub.f32 0.0, %v15_v9  ;;  %v17_v14 = vld [vmem:[%s1195_s1 + $0x30] sm:$0xff]  ;;  %v58_v21 = vsub.f32 0.0, %v18_v13  ;;  %v19_v24 = vld [vmem:[%s1195_s1 + $0x40] sm:$0xff] }
   0x4   :  { %v56_v11 = vsub.f32 0.0, %v16_v8  ;;  %v20_v15 = vld [vmem:[%s1195_s1 + $0x48] sm:$0xff]  ;;  %v95_v16 = vmul.f32 1.442695, %v53_v4  ;;  %v91_v17 = vmul.f32 1.442695, %v51_v5 }
   0x5   :  { %v97_v18 = vmul.f32 1.442695, %v54_v6  ;;  %v93_v19 = vmul.f32 1.442695, %v52_v10  ;;  %v57_v22 = vsub.f32 0.0, %v17_v14  ;;  %v60_v23 = vsub.f32 0.0, %v20_v15 }
   0x6   :  { %v101_v20 = vmul.f32 1.442695, %v56_v11  ;;  %619 = vpow2.f32 %v95_v16  ;;  %v22_v25 = vld [vmem:[%s1195_s1 + $0x58] sm:$0xff]  ;;  %v21_v26 = vld [vmem:[%s1195_s1 + $0x50] sm:$0xff]  ;;  %v99_v27 = vmul.f32 1.442695, %v55_v12 }
   0x7   :  { %621 = vpow2.f32 %v91_v17  ;;  %v59_v28 = vsub.f32 0.0, %v19_v24  ;;  %v24_v29 = vld [vmem:[%s1195_s1 + $0x68] sm:$0xff]  ;;  %v105_v30 = vmul.f32 1.442695, %v58_v21  ;;  %v62_v31 = vsub.f32 0.0, %v22_v25  ;;  %v23_v32 = vld [vmem:[%s1195_s1 + $0x60] sm:$0xff] }
   0x8   :  { %623 = vpow2.f32 %v97_v18  ;;  %v103_v33 = vmul.f32 1.442695, %v57_v22  ;;  %v61_v34 = vsub.f32 0.0, %v21_v26  ;;  %v26_v35 = vld [vmem:[%s1195_s1 + $0x78] sm:$0xff]  ;;  %v109_v36 = vmul.f32 1.442695, %v60_v23 }
   0x9   :  { %625 = vpow2.f32 %v93_v19  ;;  %v64_v37 = vsub.f32 0.0, %v24_v29  ;;  %v25_v38 = vld [vmem:[%s1195_s1 + $0x70] sm:$0xff]  ;;  %v107_v39 = vmul.f32 1.442695, %v59_v28  ;;  %v63_v40 = vsub.f32 0.0, %v23_v32  ;;  %v28_v2 = vld [vmem:[%s1195_s1 + $0x88] sm:$0xff] }
   0xa   :  { %627 = vpow2.f32 %v101_v20  ;;  %v113_v41 = vmul.f32 1.442695, %v62_v31  ;;  %v66_v42 = vsub.f32 0.0, %v26_v35  ;;  %v111_v43 = vmul.f32 1.442695, %v61_v34  ;;  %v27_v5 = vld [vmem:[%s1195_s1 + $0x80] sm:$0xff] }
   0xb   :  { %629 = vpow2.f32 %v99_v27  ;;  %v65_v44 = vsub.f32 0.0, %v25_v38  ;;  %v117_v45 = vmul.f32 1.442695, %v64_v37  ;;  %v115_v46 = vmul.f32 1.442695, %v63_v40  ;;  %v30_v8 = vld [vmem:[%s1195_s1 + $0x98] sm:$0xff] }
   0xc   :  { %631 = vpow2.f32 %v105_v30  ;;  %v121_v47 = vmul.f32 1.442695, %v66_v42  ;;  %v68_v11 = vsub.f32 0.0, %v28_v2  ;;  %v29_v12 = vld [vmem:[%s1195_s1 + $0x90] sm:$0xff]  ;;  %v67_v15 = vsub.f32 0.0, %v27_v5  ;;  %v32_v16 = vld [vmem:[%s1195_s1 + $0xa8] sm:$0xff] }
   0xd   :  { %633 = vpow2.f32 %v103_v33  ;;  %v119_v48 = vmul.f32 1.442695, %v65_v44  ;;  %v70_v19 = vsub.f32 0.0, %v30_v8  ;;  %v31_v20 = vld [vmem:[%s1195_s1 + $0xa0] sm:$0xff]  ;;  %v69_v23 = vsub.f32 0.0, %v29_v12  ;;  %v34_v24 = vld [vmem:[%s1195_s1 + $0xb8] sm:$0xff] }
   0xe   :  { %635 = vpow2.f32 %v109_v36  ;;  %v125_v27 = vmul.f32 1.442695, %v68_v11  ;;  %v72_v28 = vsub.f32 0.0, %v32_v16  ;;  %v33_v29 = vld [vmem:[%s1195_s1 + $0xb0] sm:$0xff]  ;;  %v123_v32 = vmul.f32 1.442695, %v67_v15 }
   0xf   :  { %637 = vpow2.f32 %v107_v39  ;;  %v71_v33 = vsub.f32 0.0, %v31_v20  ;;  %v36_v34 = vld [vmem:[%s1195_s1 + $0xc8] sm:$0xff]  ;;  %v129_v36 = vmul.f32 1.442695, %v70_v19  ;;  %v74_v37 = vsub.f32 0.0, %v34_v24  ;;  %v35_v38 = vld [vmem:[%s1195_s1 + $0xc0] sm:$0xff] }
  0x10   :  { %639 = vpow2.f32 %v113_v41  ;;  %v127_v40 = vmul.f32 1.442695, %v69_v23  ;;  %v73_v41 = vsub.f32 0.0, %v33_v29  ;;  %v38_v42 = vld [vmem:[%s1195_s1 + $0xd8] sm:$0xff]  ;;  %v133_v44 = vmul.f32 1.442695, %v72_v28 }
  0x11   :  { %641 = vpow2.f32 %v111_v43  ;;  %v42_v8 = vld [vmem:[%s1195_s1 + $0xf8] sm:$0xff] }
  0x12   :  { %643 = vpow2.f32 %v117_v45  ;;  %v76_v45 = vsub.f32 0.0, %v36_v34  ;;  %v44_v34 = vld [vmem:[%s1195_s1 + $0x108] sm:$0xff] }
  0x13   :  { %v620_v49 = vpop.eup %619  ;;  %645 = vpow2.f32 %v115_v46  ;;  %v37_v46 = vld [vmem:[%s1195_s1 + $0xd0] sm:$0xff] }
  0x14   :  { %v622_v50 = vpop.eup %621  ;;  %v173_v51 = vadd.f32 1.0, %v620_v49  ;;  %647 = vpow2.f32 %v121_v47  ;;  %v75_v49 = vsub.f32 0.0, %v35_v38 }
  0x15   :  { %v624_v52 = vpop.eup %623  ;;  %v171_v53 = vadd.f32 1.0, %v622_v50  ;;  %649 = vpow2.f32 %v119_v48  ;;  %v131_v48 = vmul.f32 1.442695, %v71_v33  ;;  %v40_v50 = vld [vmem:[%s1195_s1 + $0xe8] sm:$0xff] }
  0x16   :  { %v626_v54 = vpop.eup %625  ;;  %651 = vrcp.f32 %v173_v51  ;;  %v174_v55 = vadd.f32 1.0, %v624_v52  ;;  %v137_v52 = vmul.f32 1.442695, %v74_v37  ;;  %v43_v37 = vld [vmem:[%s1195_s1 + $0x100] sm:$0xff] }
  0x17   :  { %v628_v56 = vpop.eup %627  ;;  %653 = vrcp.f32 %v171_v53  ;;  %v172_v57 = vadd.f32 1.0, %v626_v54  ;;  %v78_v53 = vsub.f32 0.0, %v38_v42  ;;  %v39_v54 = vld [vmem:[%s1195_s1 + $0xe0] sm:$0xff] }
  0x18   :  { %v630_v58 = vpop.eup %629  ;;  %655 = vrcp.f32 %v174_v55  ;;  %v176_v59 = vadd.f32 1.0, %v628_v56  ;;  %v135_v56 = vmul.f32 1.442695, %v73_v41 }
  0x19   :  { %v632_v60 = vpop.eup %631  ;;  %657 = vrcp.f32 %v172_v57  ;;  %v175_v61 = vadd.f32 1.0, %v630_v58  ;;  %v77_v57 = vsub.f32 0.0, %v37_v46 }
  0x1a   :  { %v634_v62 = vpop.eup %633  ;;  %659 = vrcp.f32 %v176_v59  ;;  %v178_v63 = vadd.f32 1.0, %v632_v60  ;;  %v141_v59 = vmul.f32 1.442695, %v76_v45  ;;  %v80_v60 = vsub.f32 0.0, %v40_v50 }
  0x1b   :  { %v636_v0 = vpop.eup %635  ;;  %661 = vrcp.f32 %v175_v61  ;;  %v177_v1 = vadd.f32 1.0, %v634_v62  ;;  %v139_v62 = vmul.f32 1.442695, %v75_v49 }
  0x1c   :  { %v638_v3 = vpop.eup %637  ;;  %663 = vrcp.f32 %v178_v63  ;;  %v180_v4 = vadd.f32 1.0, %v636_v0  ;;  %v79_v63 = vsub.f32 0.0, %v39_v54  ;;  %v149_v5 = vmul.f32 1.442695, %v80_v60 }
  0x1d   :  { %v640_v6 = vpop.eup %639  ;;  %665 = vrcp.f32 %v177_v1  ;;  %v179_v7 = vadd.f32 1.0, %v638_v3  ;;  %v145_v1 = vmul.f32 1.442695, %v78_v53  ;;  %v143_v3 = vmul.f32 1.442695, %v77_v57 }
  0x1e   :  { %v642_v9 = vpop.eup %641  ;;  %667 = vrcp.f32 %v180_v4  ;;  %v182_v10 = vadd.f32 1.0, %v640_v6 }
  0x1f   :  { %v644_v13 = vpop.eup %643  ;;  %669 = vrcp.f32 %v179_v7  ;;  %v181_v14 = vadd.f32 1.0, %v642_v9  ;;  %v147_v7 = vmul.f32 1.442695, %v79_v63 }
  0x20   :  { %v646_v17 = vpop.eup %645  ;;  %671 = vrcp.f32 %v182_v10  ;;  %v184_v18 = vadd.f32 1.0, %v644_v13  ;;  %v41_v10 = vld [vmem:[%s1195_s1 + $0xf0] sm:$0xff]  ;;  %v82_v13 = vsub.f32 0.0, %v42_v8 }
  0x21   :  { %v648_v21 = vpop.eup %647  ;;  %673 = vrcp.f32 %v181_v14  ;;  %v183_v22 = vadd.f32 1.0, %v646_v17  ;;  %v81_v15 = vsub.f32 0.0, %v41_v10 }
  0x22   :  { %v650_v25 = vpop.eup %649  ;;  %675 = vrcp.f32 %v184_v18  ;;  %v186_v26 = vadd.f32 1.0, %v648_v21 }
  0x23   :  { %v652_v30 = vpop.eup %651  ;;  %677 = vrcp.f32 %v183_v22  ;;  %v185_v31 = vadd.f32 1.0, %v650_v25  ;;  %v153_v22 = vmul.f32 1.442695, %v82_v13  ;;  %v151_v25 = vmul.f32 1.442695, %v81_v15 }
  0x24   :  { %v654_v35 = vpop.eup %653  ;;  %343 = vperm.xlu1 %618, %v652_v30   ;;  %679 = vrcp.f32 %v186_v26 }
  0x25   :  { %v656_v39 = vpop.eup %655  ;;  %333 = vperm.xlu0 %617, %v654_v35   ;;  %681 = vrcp.f32 %v185_v31 }
  0x26   :  { %v658_v43 = vpop.eup %657  ;;  %683 = vpow2.f32 %v125_v27 }
  0x27   :  { %v660_v47 = vpop.eup %659  ;;  %685 = vpow2.f32 %v123_v32 }
  0x28   :  { %v662_v51 = vpop.eup %661  ;;  %348 = vperm.xlu1 %618, %v656_v39   ;;  %687 = vpow2.f32 %v129_v36 }
  0x29   :  { %v664_v55 = vpop.eup %663  ;;  %338 = vperm.xlu0 %617, %v658_v43   ;;  %689 = vpow2.f32 %v127_v40  ;;  %v46_v40 = vld [vmem:[%s1195_s1 + $0x118] sm:$0xff]  ;;  %v84_v43 = vsub.f32 0.0, %v44_v34 }
  0x2a   :  { %v666_v58 = vpop.eup %665  ;;  %691 = vpow2.f32 %v133_v44  ;;  %v45_v44 = vld [vmem:[%s1195_s1 + $0x110] sm:$0xff] }
  0x2b   :  { %v668_v61 = vpop.eup %667  ;;  %693 = vpow2.f32 %v131_v48  ;;  %v48_v48 = vld [vmem:[%s1195_s1 + $0x128] sm:$0xff]  ;;  %v85_v54 = vsub.f32 0.0, %v45_v44 }
  0x2c   :  { %v670_v0 = vpop.eup %669  ;;  %358 = vperm.xlu1 %618, %v660_v47   ;;  %695 = vpow2.f32 %v137_v52  ;;  %v83_v47 = vsub.f32 0.0, %v43_v37  ;;  %v47_v52 = vld [vmem:[%s1195_s1 + $0x120] sm:$0xff]  ;;  %v88_v57 = vsub.f32 0.0, %v48_v48 }
  0x2d   :  { %v672_v2 = vpop.eup %671  ;;  %353 = vperm.xlu0 %617, %v662_v51   ;;  %697 = vpow2.f32 %v135_v56  ;;  %v86_v51 = vsub.f32 0.0, %v46_v40  ;;  %v157_v56 = vmul.f32 1.442695, %v84_v43 }
  0x2e   :  { %v674_v4 = vpop.eup %673  ;;  %699 = vpow2.f32 %v141_v59  ;;  %v155_v60 = vmul.f32 1.442695, %v83_v47 }
  0x2f   :  { %v676_v6 = vpop.eup %675  ;;  %701 = vpow2.f32 %v139_v62  ;;  %v161_v63 = vmul.f32 1.442695, %v86_v51 }
  0x30   :  { %v678_v9 = vpop.eup %677  ;;  %368 = vperm.xlu1 %618, %v664_v55   ;;  %703 = vpow2.f32 %v145_v1  ;;  %v50_v55 = vld [vmem:[%s1195_s1 + $0x138] sm:$0xff] }
  0x31   :  { %v680_v11 = vpop.eup %679  ;;  %363 = vperm.xlu0 %617, %v666_v58   ;;  %705 = vpow2.f32 %v143_v3  ;;  %v49_v58 = vld [vmem:[%s1195_s1 + $0x130] sm:$0xff] }
  0x32   :  { %v682_v12 = vpop.eup %681  ;;  %707 = vpow2.f32 %v149_v5  ;;  %v89_v3 = vsub.f32 0.0, %v49_v58  ;;  %v165_v5 = vmul.f32 1.442695, %v88_v57 }
  0x33   :  { %v684_v14 = vpop.eup %683  ;;  %709 = vpow2.f32 %v147_v7 }
  0x34   :  { %v686_v16 = vpop.eup %685  ;;  %378 = vperm.xlu1 %618, %v668_v61   ;;  %v188_v17 = vadd.f32 1.0, %v684_v14  ;;  %v87_v61 = vsub.f32 0.0, %v47_v52 }
  0x35   :  { %v688_v18 = vpop.eup %687  ;;  %373 = vperm.xlu0 %617, %v670_v0   ;;  %v187_v19 = vadd.f32 1.0, %v686_v16  ;;  %v90_v0 = vsub.f32 0.0, %v50_v55  ;;  %v294_v55 = vld [vmem:[%s1196_s0 + $0x18] sm:$0xff] }
  0x36   :  { %v690_v20 = vpop.eup %689  ;;  %711 = vrcp.f32 %v188_v17  ;;  %v190_v21 = vadd.f32 1.0, %v688_v18  ;;  %v163_v7 = vmul.f32 1.442695, %v87_v61  ;;  %v296_v61 = vld [vmem:[%s1196_s0 + $0x28] sm:$0xff] }
  0x37   :  { %v692_v23 = vpop.eup %691  ;;  %713 = vrcp.f32 %v187_v19  ;;  %v189_v24 = vadd.f32 1.0, %v690_v20 }
  0x38   :  { %v694_v26 = vpop.eup %693  ;;  %388 = vperm.xlu1 %618, %v672_v2   ;;  %715 = vrcp.f32 %v190_v21  ;;  %v192_v27 = vadd.f32 1.0, %v692_v23  ;;  %v159_v2 = vmul.f32 1.442695, %v85_v54 }
  0x39   :  { %v696_v28 = vpop.eup %695  ;;  %383 = vperm.xlu0 %617, %v674_v4   ;;  %717 = vrcp.f32 %v189_v24  ;;  %v191_v29 = vadd.f32 1.0, %v694_v26 }
  0x3a   :  { %v698_v30 = vpop.eup %697  ;;  %v194_v31 = vadd.f32 1.0, %v696_v28  ;;  %719 = vpow2.f32 %v153_v22 }
  0x3b   :  { %v700_v32 = vpop.eup %699  ;;  %v193_v33 = vadd.f32 1.0, %v698_v30  ;;  %721 = vpow2.f32 %v151_v25 }
  0x3c   :  { %v702_v35 = vpop.eup %701  ;;  %398 = vperm.xlu1 %618, %v676_v6   ;;  %723 = vrcp.f32 %v192_v27  ;;  %v196_v36 = vadd.f32 1.0, %v700_v32 }
  0x3d   :  { %v704_v38 = vpop.eup %703  ;;  %393 = vperm.xlu0 %617, %v678_v9   ;;  %725 = vrcp.f32 %v191_v29  ;;  %v195_v39 = vadd.f32 1.0, %v702_v35  ;;  %v169_v9 = vmul.f32 1.442695, %v90_v0 }
  0x3e   :  { %v706_v41 = vpop.eup %705  ;;  %727 = vrcp.f32 %v194_v31  ;;  %v198_v42 = vadd.f32 1.0, %v704_v38 }
  0x3f   :  { %v708_v45 = vpop.eup %707  ;;  %729 = vrcp.f32 %v193_v33  ;;  %v197_v46 = vadd.f32 1.0, %v706_v41 }
  0x40   :  { %v710_v49 = vpop.eup %709  ;;  %408 = vperm.xlu1 %618, %v680_v11   ;;  %731 = vrcp.f32 %v196_v36  ;;  %v200_v50 = vadd.f32 1.0, %v708_v45  ;;  %v167_v11 = vmul.f32 1.442695, %v89_v3  ;;  %v298_v3 = vld [vmem:[%s1196_s0 + $0x38] sm:$0xff] }
  0x41   :  { %403 = vperm.xlu0 %617, %v682_v12   ;;  %733 = vrcp.f32 %v195_v39  ;;  %v199_v53 = vadd.f32 1.0, %v710_v49  ;;  %v293_v49 = vld [vmem:[%s1196_s0 + $0x10] sm:$0xff] }
  0x42   :  { %735 = vrcp.f32 %v198_v42 }
  0x43   :  { %v712_v59 = vpop.eup %711  ;;  %737 = vrcp.f32 %v197_v46 }
  0x44   :  { %v714_v62 = vpop.eup %713  ;;  %418 = vperm.xlu1 %618, %v712_v59   ;;  %739 = vrcp.f32 %v200_v50  ;;  %v291_v50 = vld [vmem:[%s1196_s0] sm:$0xff] }
  0x45   :  { %v716_v1 = vpop.eup %715  ;;  %413 = vperm.xlu0 %617, %v714_v62   ;;  %741 = vrcp.f32 %v199_v53  ;;  %v295_v62 = vld [vmem:[%s1196_s0 + $0x20] sm:$0xff] }
  0x46   :  { %v718_v4 = vpop.eup %717  ;;  %743 = vpow2.f32 %v157_v56  ;;  %v292_v56 = vld [vmem:[%s1196_s0 + $0x8] sm:$0xff] }
  0x47   :  { %v720_v6 = vpop.eup %719  ;;  %745 = vpow2.f32 %v155_v60 }
  0x48   :  { %v722_v8 = vpop.eup %721  ;;  %428 = vperm.xlu1 %618, %v716_v1   ;;  %747 = vpow2.f32 %v161_v63  ;;  %v202_v15 = vadd.f32 1.0, %v720_v6 }
  0x49   :  { %v724_v10 = vpop.eup %723  ;;  %423 = vperm.xlu0 %617, %v718_v4   ;;  %749 = vpow2.f32 %v159_v2  ;;  %v201_v17 = vadd.f32 1.0, %v722_v8  ;;  %v297_v4 = vld [vmem:[%s1196_s0 + $0x30] sm:$0xff] }
  0x4a   :  { %v726_v12 = vpop.eup %725  ;;  %751 = vpow2.f32 %v165_v5 }
  0x4b   :  { %v728_v13 = vpop.eup %727  ;;  %753 = vpow2.f32 %v163_v7 }
  0x4c   :  { %v730_v14 = vpop.eup %729  ;;  %438 = vperm.xlu1 %618, %v724_v10   ;;  %755 = vpow2.f32 %v169_v9  ;;  %v300_v9 = vld [vmem:[%s1196_s0 + $0x48] sm:$0xff]  ;;  %v299_v10 = vld [vmem:[%s1196_s0 + $0x40] sm:$0xff] }
  0x4d   :  { %v732_v16 = vpop.eup %731  ;;  %433 = vperm.xlu0 %617, %v726_v12   ;;  %757 = vpow2.f32 %v167_v11 }
  0x4e   :  { %v734_v18 = vpop.eup %733  ;;  %759 = vrcp.f32 %v202_v15  ;;  %v302_v15 = vld [vmem:[%s1196_s0 + $0x58] sm:$0xff] }
  0x4f   :  { %v736_v19 = vpop.eup %735  ;;  %761 = vrcp.f32 %v201_v17 }
  0x50   :  { %v738_v20 = vpop.eup %737  ;;  %448 = vperm.xlu1 %618, %v728_v13  }
  0x51   :  { %v740_v21 = vpop.eup %739  ;;  %443 = vperm.xlu0 %617, %v730_v14  }
  0x52   :  { %v742_v22 = vpop.eup %741 }
  0x53   :  { %v744_v23 = vpop.eup %743 }
  0x54   :  { %v746_v24 = vpop.eup %745  ;;  %458 = vperm.xlu1 %618, %v732_v16   ;;  %v204_v25 = vadd.f32 1.0, %v744_v23  ;;  %v301_v16 = vld [vmem:[%s1196_s0 + $0x50] sm:$0xff] }
  0x55   :  { %v748_v26 = vpop.eup %747  ;;  %453 = vperm.xlu0 %617, %v734_v18   ;;  %v203_v27 = vadd.f32 1.0, %v746_v24 }
  0x56   :  { %v750_v28 = vpop.eup %749  ;;  %763 = vrcp.f32 %v204_v25  ;;  %v206_v29 = vadd.f32 1.0, %v748_v26 }
  0x57   :  { %v752_v30 = vpop.eup %751  ;;  %765 = vrcp.f32 %v203_v27  ;;  %v205_v31 = vadd.f32 1.0, %v750_v28  ;;  %v306_v27 = vld [vmem:[%s1196_s0 + $0x78] sm:$0xff]  ;;  %v305_v28 = vld [vmem:[%s1196_s0 + $0x70] sm:$0xff] }
  0x58   :  { %v754_v32 = vpop.eup %753  ;;  %468 = vperm.xlu1 %618, %v736_v19   ;;  %767 = vrcp.f32 %v206_v29  ;;  %v208_v33 = vadd.f32 1.0, %v752_v30 }
  0x59   :  { %v756_v34 = vpop.eup %755  ;;  %463 = vperm.xlu0 %617, %v738_v20   ;;  %769 = vrcp.f32 %v205_v31  ;;  %v207_v35 = vadd.f32 1.0, %v754_v32 }
  0x5a   :  { %v758_v36 = vpop.eup %757  ;;  %771 = vrcp.f32 %v208_v33  ;;  %v210_v37 = vadd.f32 1.0, %v756_v34  ;;  %v308_v33 = vld [vmem:[%s1196_s0 + $0x88] sm:$0xff]  ;;  %v307_v34 = vld [vmem:[%s1196_s0 + $0x80] sm:$0xff] }
  0x5b   :  { %v760_v38 = vpop.eup %759  ;;  %773 = vrcp.f32 %v207_v35  ;;  %v209_v39 = vadd.f32 1.0, %v758_v36 }
  0x5c   :  { %478 = vperm.xlu1 %618, %v740_v21   ;;  %v762_v40 = vpop.eup %761  ;;  %775 = vrcp.f32 %v210_v37  ;;  %v304_v21 = vld [vmem:[%s1196_s0 + $0x68] sm:$0xff] }
  0x5d   :  { %473 = vperm.xlu0 %617, %v742_v22   ;;  %777 = vrcp.f32 %v209_v39  ;;  %v303_v22 = vld [vmem:[%s1196_s0 + $0x60] sm:$0xff]  ;;  %v310_v39 = vld [vmem:[%s1196_s0 + $0x98] sm:$0xff] }
  0x60   :  { %488 = vperm.xlu1 %618, %v760_v38  }
  0x61   :  { %483 = vperm.xlu0 %617, %v762_v40   ;;  %v309_v40 = vld [vmem:[%s1196_s0 + $0x90] sm:$0xff] }
  0x63   :  { %v764_v41 = vpop.eup %763 }
  0x64   :  { %v766_v42 = vpop.eup %765  ;;  %498 = vperm.xlu1 %618, %v764_v41  }
  0x65   :  { %v768_v43 = vpop.eup %767  ;;  %493 = vperm.xlu0 %617, %v766_v42  }
  0x66   :  { %v770_v44 = vpop.eup %769 }
  0x67   :  { %v772_v45 = vpop.eup %771 }
  0x68   :  { %508 = vperm.xlu1 %618, %v768_v43   ;;  %v774_v46 = vpop.eup %773 }
  0x69   :  { %503 = vperm.xlu0 %617, %v770_v44   ;;  %v776_v47 = vpop.eup %775 }
  0x6a   :  { %v778_v48 = vpop.eup %777 }
  0x6c   :  { %518 = vperm.xlu1 %618, %v772_v45   ;;  %v312_v45 = vld [vmem:[%s1196_s0 + $0xa8] sm:$0xff] }
  0x6d   :  { %513 = vperm.xlu0 %617, %v774_v46   ;;  %v311_v46 = vld [vmem:[%s1196_s0 + $0xa0] sm:$0xff] }
  0x70   :  { %528 = vperm.xlu1 %618, %v776_v47  }
  0x71   :  { %523 = vperm.xlu0 %617, %v778_v48  }
  0x9f   :  { %v344_v51 = vpop.permute.xlu1 %343 }
  0xa0   :  { %v533_v52 = vmul.f32 %v344_v51, %v293_v49  ;;  %v334_v53 = vpop.permute.xlu0 %333  ;;  %v314_v51 = vld [vmem:[%s1196_s0 + $0xb8] sm:$0xff] }
  0xa1   :  { %v531_v54 = vmul.f32 %v334_v53, %v291_v50 }
  0xa2   :  { %574 = vst.msk [vmem:[%s1197_s2 + $0x10] sm:$0xff] %vm571_vm0, %v533_v52  ;;  %v313_v52 = vld [vmem:[%s1196_s0 + $0xb0] sm:$0xff] }
  0xa3   :  { %572 = vst.msk [vmem:[%s1197_s2] sm:$0xff] %vm571_vm0, %v531_v54  ;;  %v349_v57 = vpop.permute.xlu1 %348 }
  0xa4   :  { %v534_v58 = vmul.f32 %v349_v57, %v294_v55  ;;  %v339_v59 = vpop.permute.xlu0 %338  ;;  %v316_v57 = vld [vmem:[%s1196_s0 + $0xc8] sm:$0xff] }
  0xa5   :  { %v532_v60 = vmul.f32 %v339_v59, %v292_v56 }
  0xa6   :  { %575 = vst.msk [vmem:[%s1197_s2 + $0x18] sm:$0xff] %vm571_vm0, %v534_v58  ;;  %v315_v58 = vld [vmem:[%s1196_s0 + $0xc0] sm:$0xff] }
  0xa7   :  { %573 = vst.msk [vmem:[%s1197_s2 + $0x8] sm:$0xff] %vm571_vm0, %v532_v60  ;;  %v359_v63 = vpop.permute.xlu1 %358 }
  0xa8   :  { %v536_v0 = vmul.f32 %v359_v63, %v296_v61  ;;  %v354_v1 = vpop.permute.xlu0 %353  ;;  %v318_v63 = vld [vmem:[%s1196_s0 + $0xd8] sm:$0xff] }
  0xa9   :  { %v535_v2 = vmul.f32 %v354_v1, %v295_v62 }
  0xaa   :  { %577 = vst.msk [vmem:[%s1197_s2 + $0x28] sm:$0xff] %vm571_vm0, %v536_v0  ;;  %v317_v0 = vld [vmem:[%s1196_s0 + $0xd0] sm:$0xff] }
  0xab   :  { %576 = vst.msk [vmem:[%s1197_s2 + $0x20] sm:$0xff] %vm571_vm0, %v535_v2  ;;  %v369_v5 = vpop.permute.xlu1 %368 }
  0xac   :  { %v538_v6 = vmul.f32 %v369_v5, %v298_v3  ;;  %v364_v7 = vpop.permute.xlu0 %363  ;;  %v320_v5 = vld [vmem:[%s1196_s0 + $0xe8] sm:$0xff] }
  0xad   :  { %v537_v8 = vmul.f32 %v364_v7, %v297_v4 }
  0xae   :  { %579 = vst.msk [vmem:[%s1197_s2 + $0x38] sm:$0xff] %vm571_vm0, %v538_v6  ;;  %v319_v6 = vld [vmem:[%s1196_s0 + $0xe0] sm:$0xff] }
  0xaf   :  { %578 = vst.msk [vmem:[%s1197_s2 + $0x30] sm:$0xff] %vm571_vm0, %v537_v8  ;;  %v379_v11 = vpop.permute.xlu1 %378 }
  0xb0   :  { %v540_v12 = vmul.f32 %v379_v11, %v300_v9  ;;  %v374_v13 = vpop.permute.xlu0 %373  ;;  %v322_v11 = vld [vmem:[%s1196_s0 + $0xf8] sm:$0xff] }
  0xb1   :  { %v539_v14 = vmul.f32 %v374_v13, %v299_v10 }
  0xb2   :  { %581 = vst.msk [vmem:[%s1197_s2 + $0x48] sm:$0xff] %vm571_vm0, %v540_v12  ;;  %v321_v12 = vld [vmem:[%s1196_s0 + $0xf0] sm:$0xff] }
  0xb3   :  { %580 = vst.msk [vmem:[%s1197_s2 + $0x40] sm:$0xff] %vm571_vm0, %v539_v14  ;;  %v389_v17 = vpop.permute.xlu1 %388 }
  0xb4   :  { %v542_v18 = vmul.f32 %v389_v17, %v302_v15  ;;  %v384_v19 = vpop.permute.xlu0 %383  ;;  %v324_v17 = vld [vmem:[%s1196_s0 + $0x108] sm:$0xff] }
  0xb5   :  { %v541_v20 = vmul.f32 %v384_v19, %v301_v16 }
  0xb6   :  { %583 = vst.msk [vmem:[%s1197_s2 + $0x58] sm:$0xff] %vm571_vm0, %v542_v18  ;;  %v323_v18 = vld [vmem:[%s1196_s0 + $0x100] sm:$0xff] }
  0xb7   :  { %582 = vst.msk [vmem:[%s1197_s2 + $0x50] sm:$0xff] %vm571_vm0, %v541_v20  ;;  %v399_v23 = vpop.permute.xlu1 %398 }
  0xb8   :  { %v544_v24 = vmul.f32 %v399_v23, %v304_v21  ;;  %v394_v25 = vpop.permute.xlu0 %393  ;;  %v326_v23 = vld [vmem:[%s1196_s0 + $0x118] sm:$0xff] }
  0xb9   :  { %v543_v26 = vmul.f32 %v394_v25, %v303_v22 }
  0xba   :  { %585 = vst.msk [vmem:[%s1197_s2 + $0x68] sm:$0xff] %vm571_vm0, %v544_v24  ;;  %v325_v24 = vld [vmem:[%s1196_s0 + $0x110] sm:$0xff] }
  0xbb   :  { %584 = vst.msk [vmem:[%s1197_s2 + $0x60] sm:$0xff] %vm571_vm0, %v543_v26  ;;  %v409_v29 = vpop.permute.xlu1 %408 }
  0xbc   :  { %v546_v30 = vmul.f32 %v409_v29, %v306_v27  ;;  %v404_v31 = vpop.permute.xlu0 %403  ;;  %v328_v29 = vld [vmem:[%s1196_s0 + $0x128] sm:$0xff] }
  0xbd   :  { %v545_v32 = vmul.f32 %v404_v31, %v305_v28 }
  0xbe   :  { %587 = vst.msk [vmem:[%s1197_s2 + $0x78] sm:$0xff] %vm571_vm0, %v546_v30  ;;  %v327_v30 = vld [vmem:[%s1196_s0 + $0x120] sm:$0xff] }
  0xbf   :  { %586 = vst.msk [vmem:[%s1197_s2 + $0x70] sm:$0xff] %vm571_vm0, %v545_v32  ;;  %v419_v35 = vpop.permute.xlu1 %418 }
  0xc0   :  { %v548_v36 = vmul.f32 %v419_v35, %v308_v33  ;;  %v414_v37 = vpop.permute.xlu0 %413  ;;  %v330_v35 = vld [vmem:[%s1196_s0 + $0x138] sm:$0xff] }
  0xc1   :  { %v547_v38 = vmul.f32 %v414_v37, %v307_v34 }
  0xc2   :  { %589 = vst.msk [vmem:[%s1197_s2 + $0x88] sm:$0xff] %vm571_vm0, %v548_v36  ;;  %v329_v36 = vld [vmem:[%s1196_s0 + $0x130] sm:$0xff] }
  0xc3   :  { %588 = vst.msk [vmem:[%s1197_s2 + $0x80] sm:$0xff] %vm571_vm0, %v547_v38  ;;  %v429_v41 = vpop.permute.xlu1 %428 }
  0xc4   :  { %v550_v42 = vmul.f32 %v429_v41, %v310_v39  ;;  %v424_v43 = vpop.permute.xlu0 %423 }
  0xc5   :  { %v549_v44 = vmul.f32 %v424_v43, %v309_v40 }
  0xc6   :  { %591 = vst.msk [vmem:[%s1197_s2 + $0x98] sm:$0xff] %vm571_vm0, %v550_v42 }
  0xc7   :  { %590 = vst.msk [vmem:[%s1197_s2 + $0x90] sm:$0xff] %vm571_vm0, %v549_v44  ;;  %v439_v47 = vpop.permute.xlu1 %438 }
  0xc8   :  { %v552_v48 = vmul.f32 %v439_v47, %v312_v45  ;;  %v434_v49 = vpop.permute.xlu0 %433 }
  0xc9   :  { %v551_v50 = vmul.f32 %v434_v49, %v311_v46 }
  0xca   :  { %593 = vst.msk [vmem:[%s1197_s2 + $0xa8] sm:$0xff] %vm571_vm0, %v552_v48 }
  0xcb   :  { %592 = vst.msk [vmem:[%s1197_s2 + $0xa0] sm:$0xff] %vm571_vm0, %v551_v50  ;;  %v449_v53 = vpop.permute.xlu1 %448 }
  0xcc   :  { %v554_v54 = vmul.f32 %v449_v53, %v314_v51  ;;  %v444_v55 = vpop.permute.xlu0 %443 }
  0xcd   :  { %v553_v56 = vmul.f32 %v444_v55, %v313_v52 }
  0xce   :  { %595 = vst.msk [vmem:[%s1197_s2 + $0xb8] sm:$0xff] %vm571_vm0, %v554_v54 }
  0xcf   :  { %594 = vst.msk [vmem:[%s1197_s2 + $0xb0] sm:$0xff] %vm571_vm0, %v553_v56  ;;  %v459_v59 = vpop.permute.xlu1 %458 }
  0xd0   :  { %v556_v60 = vmul.f32 %v459_v59, %v316_v57  ;;  %v454_v61 = vpop.permute.xlu0 %453 }
  0xd1   :  { %v555_v62 = vmul.f32 %v454_v61, %v315_v58 }
  0xd2   :  { %597 = vst.msk [vmem:[%s1197_s2 + $0xc8] sm:$0xff] %vm571_vm0, %v556_v60 }
  0xd3   :  { %596 = vst.msk [vmem:[%s1197_s2 + $0xc0] sm:$0xff] %vm571_vm0, %v555_v62  ;;  %v469_v1 = vpop.permute.xlu1 %468 }
  0xd4   :  { %v558_v2 = vmul.f32 %v469_v1, %v318_v63  ;;  %v464_v3 = vpop.permute.xlu0 %463 }
  0xd5   :  { %v557_v4 = vmul.f32 %v464_v3, %v317_v0 }
  0xd6   :  { %599 = vst.msk [vmem:[%s1197_s2 + $0xd8] sm:$0xff] %vm571_vm0, %v558_v2 }
  0xd7   :  { %598 = vst.msk [vmem:[%s1197_s2 + $0xd0] sm:$0xff] %vm571_vm0, %v557_v4  ;;  %v479_v7 = vpop.permute.xlu1 %478 }
  0xd8   :  { %v560_v8 = vmul.f32 %v479_v7, %v320_v5  ;;  %v474_v9 = vpop.permute.xlu0 %473 }
  0xd9   :  { %v559_v10 = vmul.f32 %v474_v9, %v319_v6 }
  0xda   :  { %601 = vst.msk [vmem:[%s1197_s2 + $0xe8] sm:$0xff] %vm571_vm0, %v560_v8 }
  0xdb   :  { %600 = vst.msk [vmem:[%s1197_s2 + $0xe0] sm:$0xff] %vm571_vm0, %v559_v10  ;;  %v489_v13 = vpop.permute.xlu1 %488 }
  0xdc   :  { %v562_v14 = vmul.f32 %v489_v13, %v322_v11  ;;  %v484_v15 = vpop.permute.xlu0 %483 }
  0xdd   :  { %v561_v16 = vmul.f32 %v484_v15, %v321_v12 }
  0xde   :  { %603 = vst.msk [vmem:[%s1197_s2 + $0xf8] sm:$0xff] %vm571_vm0, %v562_v14 }
  0xdf   :  { %602 = vst.msk [vmem:[%s1197_s2 + $0xf0] sm:$0xff] %vm571_vm0, %v561_v16  ;;  %v499_v19 = vpop.permute.xlu1 %498 }
  0xe0   :  { %v564_v20 = vmul.f32 %v499_v19, %v324_v17  ;;  %v494_v21 = vpop.permute.xlu0 %493 }
  0xe1   :  { %v563_v22 = vmul.f32 %v494_v21, %v323_v18 }
  0xe2   :  { %605 = vst.msk [vmem:[%s1197_s2 + $0x108] sm:$0xff] %vm571_vm0, %v564_v20 }
  0xe3   :  { %604 = vst.msk [vmem:[%s1197_s2 + $0x100] sm:$0xff] %vm571_vm0, %v563_v22  ;;  %v509_v25 = vpop.permute.xlu1 %508 }
  0xe4   :  { %v566_v26 = vmul.f32 %v509_v25, %v326_v23  ;;  %v504_v27 = vpop.permute.xlu0 %503 }
  0xe5   :  { %v565_v28 = vmul.f32 %v504_v27, %v325_v24 }
  0xe6   :  { %607 = vst.msk [vmem:[%s1197_s2 + $0x118] sm:$0xff] %vm571_vm0, %v566_v26 }
  0xe7   :  { %606 = vst.msk [vmem:[%s1197_s2 + $0x110] sm:$0xff] %vm571_vm0, %v565_v28  ;;  %v519_v31 = vpop.permute.xlu1 %518 }
  0xe8   :  { %v568_v32 = vmul.f32 %v519_v31, %v328_v29  ;;  %v514_v33 = vpop.permute.xlu0 %513 }
  0xe9   :  { %v567_v34 = vmul.f32 %v514_v33, %v327_v30 }
  0xea   :  { %609 = vst.msk [vmem:[%s1197_s2 + $0x128] sm:$0xff] %vm571_vm0, %v568_v32 }
  0xeb   :  { %608 = vst.msk [vmem:[%s1197_s2 + $0x120] sm:$0xff] %vm571_vm0, %v567_v34  ;;  %v529_v37 = vpop.permute.xlu1 %528 }
  0xec   :  { %v570_v38 = vmul.f32 %v529_v37, %v330_v35  ;;  %v524_v39 = vpop.permute.xlu0 %523 }
  0xed   :  { %v569_v40 = vmul.f32 %v524_v39, %v329_v36 }
  0xee   :  { %611 = vst.msk [vmem:[%s1197_s2 + $0x138] sm:$0xff] %vm571_vm0, %v570_v38 }
  0xef   :  { %610 = vst.msk [vmem:[%s1197_s2 + $0x130] sm:$0xff] %vm571_vm0, %v569_v40 }

</bundles_post_ra>
